<compile_context>
chip_gen: v7x
topology: tpu7x:2x2x1
jax: 0.10.0
libtpu: 0.0.40
codegen_flags: <defaults>
</compile_context>

<pallas_src>
import math

import jax
import jax.numpy as jnp
from jax.experimental import pallas as pl
from jax.experimental.pallas import tpu as pltpu


def _round_up(x: int, m: int) -> int:
    return (x + m - 1) // m * m


def value_net_kernel(x_ref, w1_ref, b1_ref, w2_ref, b2_ref, w3_ref, b3_ref, o_ref):
    # x_ref: (TM, D) rows of the flattened state
    # w1:(D,H1) b1:(1,H1)  w2:(H1,H2) b2:(1,H2)  w3:(1,H2)  b3: SMEM (1,)
    # o_ref: (1, TM)  -- lane-dense (values on the lane axis)
    cdt = w1_ref.dtype  # compute dtype for MXU inputs (f32 or bf16)

    x = x_ref[...]
    h1 = jnp.dot(x, w1_ref[...], preferred_element_type=jnp.float32) + b1_ref[...]
    h1 = jnp.maximum(h1, 0.0).astype(cdt)

    h2 = jnp.dot(h1, w2_ref[...], preferred_element_type=jnp.float32) + b2_ref[...]
    h2 = jnp.maximum(h2, 0.0).astype(cdt)

    # Final 1-wide layer: (1,H2) contracted with (TM,H2) along H2 -> (1, TM).
    # Same structure as the q @ k.T pattern; gives the transposed (lane-dense)
    # output layout directly with no extra relayout.
    q = jax.lax.dot_general(
        w3_ref[...], h2,
        dimension_numbers=(((1,), (1,)), ((), ())),
        preferred_element_type=jnp.float32,
    )
    o_ref[...] = (q + b3_ref[0]).astype(o_ref.dtype)


def value_network_forward(state, params, *, row_tile=256):
    """state: [..., input_dims] -> value: [..., 1] (float32)."""
    w1, b1, w2, b2, w3, b3 = params
    cdt = w1.dtype

    D = state.shape[-1]
    lead = state.shape[:-1]
    N = math.prod(lead) if lead else 1
    x2d = state.reshape(N, D).astype(cdt)

    H1 = w1.shape[1]
    H2 = w2.shape[1]
    assert w1.shape[0] == D and w2.shape[0] == H1 and w3.shape == (1, H2)

    # Row tile: big for throughput, capped (multiple of 8) for tiny batches.
    tile = min(row_tile, _round_up(N, 8))
    n_pad = _round_up(N, tile)
    if n_pad != N:
        x2d = jnp.pad(x2d, ((0, n_pad - N), (0, 0)))

    out = pl.pallas_call(
        value_net_kernel,
        out_shape=jax.ShapeDtypeStruct((1, n_pad), jnp.float32),
        grid_spec=pltpu.PrefetchScalarGridSpec(
            num_scalar_prefetch=0,
            grid=(n_pad // tile,),
            in_specs=[
                pl.BlockSpec((tile, D), lambda i: (i, 0)),   # x rows
                pl.BlockSpec((D, H1), lambda i: (0, 0)),     # w1 (resident)
                pl.BlockSpec((1, H1), lambda i: (0, 0)),     # b1
                pl.BlockSpec((H1, H2), lambda i: (0, 0)),    # w2 (resident)
                pl.BlockSpec((1, H2), lambda i: (0, 0)),     # b2
                pl.BlockSpec((1, H2), lambda i: (0, 0)),     # w3 (row vector)
                pl.BlockSpec(memory_space=pltpu.MemorySpace.SMEM),  # b3 scalar
            ],
            out_specs=pl.BlockSpec((1, tile), lambda i: (0, i)),
        ),
        compiler_params=pltpu.CompilerParams(
            dimension_semantics=("parallel",),
        ),
    )(x2d, w1, b1, w2, b2, w3, b3)

    v = out[0, :N]
    return v.reshape(lead + (1,))


def init_params(key, input_dims, fc1_dims, fc2_dims, dtype=jnp.float32):
    """torch.nn.Linear-style uniform fan-in init; weights stored transposed (x @ W)."""
    ks = jax.random.split(key, 6)

    def u(k, shape, fan_in):
        bound = 1.0 / math.sqrt(fan_in)
        return jax.random.uniform(k, shape, jnp.float32, -bound, bound)

    w1 = u(ks[0], (input_dims, fc1_dims), input_dims).astype(dtype)
    b1 = u(ks[1], (1, fc1_dims), input_dims)              # biases stay f32
    w2 = u(ks[2], (fc1_dims, fc2_dims), fc1_dims).astype(dtype)
    b2 = u(ks[3], (1, fc2_dims), fc1_dims)
    w3 = u(ks[4], (1, fc2_dims), fc2_dims).astype(dtype)  # row vector (torch layout)
    b3 = u(ks[5], (1,), fc2_dims)
    return (w1, b1, w2, b2, w3, b3)


def reference_forward(state, params):
    w1, b1, w2, b2, w3, b3 = params
    x = state.reshape(-1, state.shape[-1]).astype(jnp.float32)
    h1 = jnp.maximum(x @ w1.astype(jnp.float32) + b1, 0.0)
    h2 = jnp.maximum(h1 @ w2.astype(jnp.float32) + b2, 0.0)
    v = h2 @ w3.astype(jnp.float32).T + b3
    return v.reshape(state.shape[:-1] + (1,))


if __name__ == "__main__":
    # Small shapes consistent with the module: state [..., input_dims],
    # hidden sizes = module defaults (256).
    input_dims = 20
    fc1_dims = fc2_dims = 256
    B, S = 2, 8

    key = jax.random.PRNGKey(0)
    k_state, k_big, k_params = jax.random.split(key, 3)

    params = init_params(k_params, input_dims, fc1_dims, fc2_dims, dtype=jnp.float32)

    # 1) Small-shape run (single tile), f32.
    state = jax.random.normal(k_state, (B, S, input_dims), jnp.float32)
    v = value_network_forward(state, params)
    jax.block_until_ready(v)
    ref = reference_forward(state, params)
    assert v.shape == (B, S, 1)
    assert jnp.allclose(v, ref, atol=1e-3, rtol=1e-3), float(jnp.max(jnp.abs(v - ref)))

    # 2) Multi-tile run (row_tile=256, grid > 1), f32.
    big_state = jax.random.normal(k_big, (4, 256, input_dims), jnp.float32)
    v_big = value_network_forward(big_state, params)
    jax.block_until_ready(v_big)
    ref_big = reference_forward(big_state, params)
    assert v_big.shape == (4, 256, 1)
    assert jnp.allclose(v_big, ref_big, atol=1e-3, rtol=1e-3)

    # 3) bf16-weight run (MXU-friendly on v6e/v7x; f32 accumulation in-kernel).
    params_bf16 = tuple(
        p.astype(jnp.bfloat16) if i in (0, 2, 4) else p for i, p in enumerate(params)
    )
    v_bf16 = value_network_forward(big_state, params_bf16)
    jax.block_until_ready(v_bf16)
    assert v_bf16.shape == ref_big.shape
    assert float(jnp.max(jnp.abs(v_bf16.astype(jnp.float32) - ref_big))) < 0.1

    # TODO(synk): optimizer (Adam) and checkpoint save/load from the module are
    # host-side training utilities with no kernel equivalent; only forward() is implemented.
    print("KERNEL_OK")
</pallas_src>

<mosaic_0001>
module attributes {stable_mosaic.version = 11 : i64} {
  func.func @value_net_kernel(%arg0: i32, %arg1: memref<16x20xf32, #tpu.memory_space<vmem>>, %arg2: memref<20x256xf32, #tpu.memory_space<vmem>>, %arg3: memref<1x256xf32, #tpu.memory_space<vmem>>, %arg4: memref<256x256xf32, #tpu.memory_space<vmem>>, %arg5: memref<1x256xf32, #tpu.memory_space<vmem>>, %arg6: memref<1x256xf32, #tpu.memory_space<vmem>>, %arg7: memref<1xf32, #tpu.memory_space<smem>>, %arg8: memref<1x16xf32, #tpu.memory_space<vmem>>) attributes {dimension_semantics = [#tpu.dimension_semantics<parallel>], iteration_bounds = array<i64: 1>, scalar_prefetch = 0 : i64, scratch_operands = 0 : i64, tpu.core_type = #tpu.core_type<tc>, window_params = [{transform_indices = @transform_0, window_bounds = array<i64: 16, 20>}, {pipeline_mode = #tpu.pipeline_mode<synchronous>, transform_indices = @transform_1, window_bounds = array<i64: 20, 256>}, {pipeline_mode = #tpu.pipeline_mode<synchronous>, transform_indices = @transform_2, window_bounds = array<i64: 1, 256>}, {pipeline_mode = #tpu.pipeline_mode<synchronous>, transform_indices = @transform_3, window_bounds = array<i64: 256, 256>}, {pipeline_mode = #tpu.pipeline_mode<synchronous>, transform_indices = @transform_4, window_bounds = array<i64: 1, 256>}, {pipeline_mode = #tpu.pipeline_mode<synchronous>, transform_indices = @transform_5, window_bounds = array<i64: 1, 256>}, {transform_indices = @transform_6, window_bounds = array<i64: 1>}, {transform_indices = @transform_7, window_bounds = array<i64: 1, 16>}]} {
    %c0 = arith.constant 0 : index
    %c0_0 = arith.constant 0 : index
    %0 = vector.load %arg1[%c0, %c0_0] : memref<16x20xf32, #tpu.memory_space<vmem>>, vector<16x20xf32>
    %c0_1 = arith.constant 0 : index
    %c0_2 = arith.constant 0 : index
    %1 = vector.load %arg2[%c0_1, %c0_2] : memref<20x256xf32, #tpu.memory_space<vmem>>, vector<20x256xf32>
    %cst = arith.constant dense<0.000000e+00> : vector<16x256xf32>
    %2 = tpu.matmul %0, %1, %cst {dimension_numbers = #tpu.dot_dimension_numbers<[1], [0], [0], [1], [0, 0, 1, 1], [], []>} : vector<16x20xf32>, vector<20x256xf32>, vector<16x256xf32> -> vector<16x256xf32>
    %c0_3 = arith.constant 0 : index
    %c0_4 = arith.constant 0 : index
    %3 = vector.load %arg3[%c0_3, %c0_4] : memref<1x256xf32, #tpu.memory_space<vmem>>, vector<1x256xf32>
    %4 = vector.broadcast %3 : vector<1x256xf32> to vector<16x256xf32>
    %5 = arith.addf %2, %4 : vector<16x256xf32>
    %cst_5 = arith.constant 0.000000e+00 : f32
    %6 = vector.broadcast %cst_5 : f32 to vector<16x256xf32>
    %7 = arith.maximumf %5, %6 : vector<16x256xf32>
    %c0_6 = arith.constant 0 : index
    %c0_7 = arith.constant 0 : index
    %8 = vector.load %arg4[%c0_6, %c0_7] : memref<256x256xf32, #tpu.memory_space<vmem>>, vector<256x256xf32>
    %cst_8 = arith.constant dense<0.000000e+00> : vector<16x256xf32>
    %9 = tpu.matmul %7, %8, %cst_8 {dimension_numbers = #tpu.dot_dimension_numbers<[1], [0], [0], [1], [0, 0, 1, 1], [], []>} : vector<16x256xf32>, vector<256x256xf32>, vector<16x256xf32> -> vector<16x256xf32>
    %c0_9 = arith.constant 0 : index
    %c0_10 = arith.constant 0 : index
    %10 = vector.load %arg5[%c0_9, %c0_10] : memref<1x256xf32, #tpu.memory_space<vmem>>, vector<1x256xf32>
    %11 = vector.broadcast %10 : vector<1x256xf32> to vector<16x256xf32>
    %12 = arith.addf %9, %11 : vector<16x256xf32>
    %cst_11 = arith.constant 0.000000e+00 : f32
    %13 = vector.broadcast %cst_11 : f32 to vector<16x256xf32>
    %14 = arith.maximumf %12, %13 : vector<16x256xf32>
    %c0_12 = arith.constant 0 : index
    %c0_13 = arith.constant 0 : index
    %15 = vector.load %arg6[%c0_12, %c0_13] : memref<1x256xf32, #tpu.memory_space<vmem>>, vector<1x256xf32>
    %cst_14 = arith.constant dense<0.000000e+00> : vector<1x16xf32>
    %16 = tpu.matmul %15, %14, %cst_14 {dimension_numbers = #tpu.dot_dimension_numbers<[1], [1], [0], [0], [0, 0, 1, 0], [], []>} : vector<1x256xf32>, vector<16x256xf32>, vector<1x16xf32> -> vector<1x16xf32>
    %c0_15 = arith.constant 0 : index
    %17 = memref.load %arg7[%c0_15] : memref<1xf32, #tpu.memory_space<smem>>
    %18 = vector.broadcast %17 : f32 to vector<1x16xf32>
    %19 = arith.addf %16, %18 : vector<1x16xf32>
    %c0_16 = arith.constant 0 : index
    %c0_17 = arith.constant 0 : index
    %20 = vector.load %arg8[%c0_16, %c0_17] : memref<1x16xf32, #tpu.memory_space<vmem>>, vector<1x16xf32>
    tpu.vector_store %arg8[%c0_16, %c0_17], %19 {strides = array<i32>} : memref<1x16xf32, #tpu.memory_space<vmem>>, vector<1x16xf32>,
    return
  }
  func.func @transform_0(%arg0: i32) -> (i32, i32) {
    %c0_i32 = arith.constant 0 : i32
    %c0_i32_0 = arith.constant 0 : i32
    return %arg0, %c0_i32 : i32, i32
  }
  func.func @transform_1(%arg0: i32) -> (i32, i32) {
    %c0_i32 = arith.constant 0 : i32
    %c0_i32_0 = arith.constant 0 : i32
    %c0_i32_1 = arith.constant 0 : i32
    return %c0_i32, %c0_i32_0 : i32, i32
  }
  func.func @transform_2(%arg0: i32) -> (i32, i32) {
    %c0_i32 = arith.constant 0 : i32
    %c0_i32_0 = arith.constant 0 : i32
    %c0_i32_1 = arith.constant 0 : i32
    return %c0_i32, %c0_i32_0 : i32, i32
  }
  func.func @transform_3(%arg0: i32) -> (i32, i32) {
    %c0_i32 = arith.constant 0 : i32
    %c0_i32_0 = arith.constant 0 : i32
    %c0_i32_1 = arith.constant 0 : i32
    return %c0_i32, %c0_i32_0 : i32, i32
  }
  func.func @transform_4(%arg0: i32) -> (i32, i32) {
    %c0_i32 = arith.constant 0 : i32
    %c0_i32_0 = arith.constant 0 : i32
    %c0_i32_1 = arith.constant 0 : i32
    return %c0_i32, %c0_i32_0 : i32, i32
  }
  func.func @transform_5(%arg0: i32) -> (i32, i32) {
    %c0_i32 = arith.constant 0 : i32
    %c0_i32_0 = arith.constant 0 : i32
    %c0_i32_1 = arith.constant 0 : i32
    return %c0_i32, %c0_i32_0 : i32, i32
  }
  func.func @transform_6(%arg0: i32) -> i32 {
    %c0_i32 = arith.constant 0 : i32
    %c0_i32_0 = arith.constant 0 : i32
    return %c0_i32 : i32
  }
  func.func @transform_7(%arg0: i32) -> (i32, i32) {
    %c0_i32 = arith.constant 0 : i32
    %c0_i32_0 = arith.constant 0 : i32
    return %c0_i32, %arg0 : i32, i32
  }
}

</mosaic_0001>

<bundles_post_ra>
// kernel: tpu_custom_call.1
= control target key start
LH: loop header
LB: loop body
LE: loop exit
PB: predicated region body
PF: predicated region fallthrough
CT: control target
= control target key end

     0   :  { %13 = vsyncpa [#allocation4], 0  ;;  %s741_s0 = inlined_call_operand.hbm [shape: f32[16,20], index: 0, kind: input, shape index: {}]   ;;  %s742_s1 = inlined_call_operand.hbm [shape: f32[20,256], index: 1, kind: input, shape index: {}]   ;;  %s743_s2 = inlined_call_operand.vmem [shape: f32[1,256], index: 2, kind: input, shape index: {}]   ;;  %s744_s3 = inlined_call_operand.hbm [shape: f32[256,256], index: 3, kind: input, shape index: {}]   ;;  %s745_s4 = inlined_call_operand.vmem [shape: f32[1,256], index: 4, kind: input, shape index: {}]   ;;  %s746_s5 = inlined_call_operand.vmem [shape: f32[1,256], index: 5, kind: input, shape index: {}]   ;;  %s747_s6 = inlined_call_operand.<no memory space> [shape: f32[1], index: 6, kind: input, shape index: {}]   ;;  %s748_s7 = inlined_call_operand.hbm [shape: f32[1,16], index: 7, kind: output, shape index: {}]  }
   0x1   :  { %14 = vsyncpa [#allocation7], 0 }
   0x2   :  { %15 = vsyncpa [#allocation5], 0  ;;  %s622_s24 = smov [#allocation6]   ;;  %s528_s28 = scalar_lea.hbm %s742_s1, 768 }
   0x3   :  { %s33_s25 = sshll.u32 %s622_s24, 4  ;;  %p529_p0 = scmp.ne.s32.totalorder %s742_s1, %s528_s28  ;;  %s34_s25 = int_to_ptr.vmem [resolvable:$true] %s33_s25 }
   0x4   :  { %p532_p1 = scmp.lt.u32.totalorder %s528_s28, %s742_s1 }
   0x6   :  { %p534_p2 = pnand %p532_p1, %p529_p0 }
   0x8   :  { %537 = shalt.err (!%p534_p2)
}
   0x9   :  { %s538_s10 = scalar_lea.vmem %s34_s25, 768  ;;  %p543_p4 = scmp.lt.s32.totalorder %s34_s25, %s34_s25 }
   0xa   :  { %p539_p3 = scmp.ne.s32.totalorder %s34_s25, %s538_s10  ;;  %p544_p5 = scmp.lt.s32.totalorder %s538_s10, %s538_s10 }
   0xc   :  { %p545_p6 = por %p544_p5, %p543_p4 }
   0xe   :  { %p546_p7 = pnand %p545_p6, %p539_p3 }
  0x10   :  { %549 = shalt.err (!%p546_p7)
}
  0x11   :  { %s623_s11 = smov 256   ;;  %s624_s12 = smov 16  }
  0x12   :  { %39 = dma.hbm_to_vmem [thread:$0]  %s742_s1, 768, %s34_s25, [#allocation7], %s623_s11, %s623_s11, %s624_s12  }
  0x13   :  { %s625_s15 = smov [#allocation3]   ;;  %s550_s19 = scalar_lea.hbm %s741_s0, 256 }
  0x14   :  { %s21_s16 = sshll.u32 %s625_s15, 4  ;;  %p551_p8 = scmp.ne.s32.totalorder %s741_s0, %s550_s19  ;;  %s22_s16 = int_to_ptr.vmem [resolvable:$true] %s21_s16 }
  0x15   :  { %p554_p9 = scmp.lt.u32.totalorder %s550_s19, %s741_s0 }
  0x17   :  { %p556_p10 = pnand %p554_p9, %p551_p8 }
  0x19   :  { %559 = shalt.err (!%p556_p10)
}
  0x1a   :  { %s560_s24 = scalar_lea.vmem %s22_s16, 256  ;;  %p565_p12 = scmp.lt.s32.totalorder %s22_s16, %s22_s16 }
  0x1b   :  { %p561_p11 = scmp.ne.s32.totalorder %s22_s16, %s560_s24  ;;  %p566_p13 = scmp.lt.s32.totalorder %s560_s24, %s560_s24 }
  0x1d   :  { %p567_p0 = por %p566_p13, %p565_p12 }
  0x1f   :  { %p568_p1 = pnand %p567_p0, %p561_p11 }
  0x21   :  { %571 = shalt.err (!%p568_p1)
}
  0x22   :  { %s626_s1 = smov 128   ;;  %s627_s25 = smov 8  }
  0x23   :  { %27 = dma.hbm_to_vmem [thread:$0]  %s741_s0, 256, %s22_s16, [#allocation4], %s626_s1, %s626_s1, %s627_s25  }
  0x24   :  { %s628_s28 = smov [#allocation8]   ;;  %s572_s9 = scalar_lea.hbm %s744_s3, 8192 }
  0x25   :  { %s47_s29 = sshll.u32 %s628_s28, 4  ;;  %p573_p2 = scmp.ne.s32.totalorder %s744_s3, %s572_s9  ;;  %s48_s29 = int_to_ptr.vmem [resolvable:$true] %s47_s29 }
  0x26   :  { %p576_p3 = scmp.lt.u32.totalorder %s572_s9, %s744_s3 }
  0x28   :  { %p578_p4 = pnand %p576_p3, %p573_p2 }
  0x2a   :  { %581 = shalt.err (!%p578_p4)
}
  0x2b   :  { %s582_s17 = scalar_lea.vmem %s48_s29, 8192  ;;  %p587_p6 = scmp.lt.s32.totalorder %s48_s29, %s48_s29 }
  0x2c   :  { %p583_p5 = scmp.ne.s32.totalorder %s48_s29, %s582_s17  ;;  %p588_p7 = scmp.lt.s32.totalorder %s582_s17, %s582_s17 }
  0x2e   :  { %p589_p8 = por %p588_p7, %p587_p6 }
  0x30   :  { %p590_p9 = pnand %p589_p8, %p583_p5 }
  0x32   :  { %593 = shalt.err (!%p590_p9)
}
  0x33   :  { %53 = dma.hbm_to_vmem [thread:$0]  %s744_s3, 8192, %s48_s29, [#allocation7], %s623_s11, %s623_s11, %s624_s12  }
  0x34   :  { %616 = dma.done.wait [#allocation4], 256  }
  0x35   :  { %617 = vsyncadd [#allocation4], 4294967040 }
  0x36   :  { %618 = dma.done.wait [#allocation7], 8960  }
  0x37   :  { %619 = vsyncadd [#allocation7], 4294958336  ;;  %v629_v0 = vmov 0.0   ;;  %v72_v1 = vld [vmem:[#allocation6 + $0x8] sm:$0xff]  ;;  %v74_v2 = vld [vmem:[#allocation6 + $0x18] sm:$0xff]  ;;  %vm96_vm0 = vcmask 1043456  }
  0x38   :  { %167 = vmatprep.mubr.f32.mxu0 %v629_v0  ;;  %v71_v3 = vld [vmem:[#allocation6] sm:$0xff]  ;;  %v447_v4 = vpack.c.bf16 %v74_v2, %v72_v1  ;;  %v73_v5 = vld [vmem:[#allocation6 + $0x10] sm:$0xff]  ;;  %v76_v7 = vld [vmem:[#allocation6 + $0x28] sm:$0xf]  ;;  %vm89_vm1 = vcmask 162816   ;;  %s630_s20 = smov [#allocation9]  }
  0x39   :  { %v449_v6 = vpack.c.bf16 %v73_v5, %v71_v3  ;;  %v185_v8 = vld [vmem:[#allocation8 + $0x8] sm:$0xff]  ;;  %v75_v9 = vld [vmem:[#allocation6 + $0x20] sm:$0xf]  ;;  %v187_v10 = vld [vmem:[#allocation8 + $0x18] sm:$0xff]  ;;  %s433_s21 = sshll.u32 %s630_s20, 4  ;;  %vm425_vm2 = vcmask 122880   ;;  %s434_s21 = int_to_ptr.vmem [resolvable:$true] %s433_s21 }
  0x3a   :  { %448 = vmatprep.subr.bf16.mxu0 %v447_v4  ;;  %v184_v11 = vld [vmem:[#allocation8] sm:$0xff]  ;;  %v186_v12 = vld [vmem:[#allocation8 + $0x10] sm:$0xff]  ;;  %v451_v13 = vpack.c.bf16 %v187_v10, %v185_v8  ;;  %v189_v15 = vld [vmem:[#allocation8 + $0x28] sm:$0xff]  ;;  %s594_s22 = scalar_lea.vmem %s434_s21, 16  ;;  %s598_s23 = scalar_lea.vmem %s434_s21, 32 }
  0x3b   :  { %450 = vmatpush1.bf16.msra.mxu0 %v449_v6  ;;  %v453_v14 = vpack.c.bf16 %v186_v12, %v184_v11  ;;  %v191_v16 = vld [vmem:[#allocation8 + $0x38] sm:$0xff]  ;;  %v188_v17 = vld [vmem:[#allocation8 + $0x20] sm:$0xff]  ;;  %v190_v19 = vld [vmem:[#allocation8 + $0x30] sm:$0xff]  ;;  %p595_p10 = scmp.ne.s32.totalorder %s434_s21, %s594_s22  ;;  %p599_p11 = scmp.lt.s32.totalorder %s434_s21, %s434_s21 }
  0x3c   :  { %443 = vmatprep.subr.msk.mxu0 %vm96_vm0, %v76_v7  ;;  %v455_v18 = vpack.c.bf16 %v191_v16, %v189_v15  ;;  %v193_v20 = vld [vmem:[#allocation8 + $0x48] sm:$0xff]  ;;  %v195_v21 = vld [vmem:[#allocation8 + $0x58] sm:$0xff]  ;;  %v69_v22 = vld [vmem:[#allocation3] sm:$0xff]  ;;  %452 = vmatprep.subr.bf16.mxu1 %v451_v13  ;;  %v457_v23 = vpack.c.bf16 %v190_v19, %v188_v17  ;;  %p600_p12 = scmp.lt.s32.totalorder %s598_s23, %s594_s22 }
  0x3d   :  { %454 = vmatpush1.bf16.msra.mxu1 %v453_v14  ;;  %v459_v24 = vpack.c.bf16 %v195_v21, %v193_v20  ;;  %v192_v25 = vld [vmem:[#allocation8 + $0x40] sm:$0xff]  ;;  %v194_v26 = vld [vmem:[#allocation8 + $0x50] sm:$0xff]  ;;  %v197_v27 = vld [vmem:[#allocation8 + $0x68] sm:$0xff] }
  0x3e   :  { %456 = vmatprep.subr.bf16.mxu1 %v455_v18  ;;  %v199_v28 = vld [vmem:[#allocation8 + $0x78] sm:$0xff]  ;;  %v70_v29 = vld [vmem:[#allocation3 + $0x8] sm:$0xff]  ;;  %v461_v30 = vpack.c.bf16 %v194_v26, %v192_v25  ;;  %v196_v32 = vld [vmem:[#allocation8 + $0x60] sm:$0xff]  ;;  %p601_p13 = por %p600_p12, %p599_p11 }
  0x3f   :  { %444 = vmatpush1.msk.msra.mxu0 %vm96_vm0, %v75_v9  ;;  %v463_v31 = vpack.c.bf16 %v199_v28, %v197_v27  ;;  %v198_v33 = vld [vmem:[#allocation8 + $0x70] sm:$0xff]  ;;  %v201_v34 = vld [vmem:[#allocation8 + $0x88] sm:$0xff]  ;;  %v203_v35 = vld [vmem:[#allocation8 + $0x98] sm:$0xff] }
  0x40   :  { %445 = vmatmul.mubr.msk.f32.vlgmr.msra.gmra.mrb[0].mxu0 %vm89_vm1, %v69_v22  ;;  %v465_v36 = vpack.c.bf16 %v198_v33, %v196_v32  ;;  %v467_v37 = vpack.c.bf16 %v203_v35, %v201_v34  ;;  %v200_v38 = vld [vmem:[#allocation8 + $0x80] sm:$0xff]  ;;  %v202_v39 = vld [vmem:[#allocation8 + $0x90] sm:$0xff]  ;;  %v205_v40 = vld [vmem:[#allocation8 + $0xa8] sm:$0xff]  ;;  %p602_p0 = pnand %p601_p13, %p595_p10 }
  0x41   :  { %173 = vmatprep.mubr.f32.mxu0 %v629_v0  ;;  %458 = vmatpush1.bf16.msra.mxu1 %v457_v23  ;;  %v207_v41 = vld [vmem:[#allocation8 + $0xb8] sm:$0xff]  ;;  %v469_v42 = vpack.c.bf16 %v202_v39, %v200_v38  ;;  %v204_v44 = vld [vmem:[#allocation8 + $0xa0] sm:$0xff]  ;;  %v206_v45 = vld [vmem:[#allocation8 + $0xb0] sm:$0xff] }
  0x42   :  { %460 = vmatprep.subr.bf16.mxu1 %v459_v24  ;;  %v471_v43 = vpack.c.bf16 %v207_v41, %v205_v40  ;;  %v209_v46 = vld [vmem:[#allocation8 + $0xc8] sm:$0xff]  ;;  %v211_v47 = vld [vmem:[#allocation8 + $0xd8] sm:$0xff]  ;;  %v473_v48 = vpack.c.bf16 %v206_v45, %v204_v44  ;;  %v208_v50 = vld [vmem:[#allocation8 + $0xc0] sm:$0xff] }
  0x43   :  { %v475_v49 = vpack.c.bf16 %v211_v47, %v209_v46  ;;  %v210_v51 = vld [vmem:[#allocation8 + $0xd0] sm:$0xff]  ;;  %v213_v52 = vld [vmem:[#allocation8 + $0xe8] sm:$0xff]  ;;  %v215_v53 = vld [vmem:[#allocation8 + $0xf8] sm:$0xff] }
  0x44   :  { %446 = vmatmul.mubr.msk.f32.gmra.mrb[2].mxu0 %vm89_vm1, %v70_v29  ;;  %v477_v54 = vpack.c.bf16 %v210_v51, %v208_v50  ;;  %v479_v55 = vpack.c.bf16 %v215_v53, %v213_v52  ;;  %v212_v56 = vld [vmem:[#allocation8 + $0xe0] sm:$0xff]  ;;  %v214_v57 = vld [vmem:[#allocation8 + $0xf0] sm:$0xff]  ;;  %v217_v58 = vld [vmem:[#allocation8 + $0x108] sm:$0xff] }
  0x45   :  { %462 = vmatpush1.bf16.msra.mxu1 %v461_v30  ;;  %v219_v59 = vld [vmem:[#allocation8 + $0x118] sm:$0xff]  ;;  %v481_v60 = vpack.c.bf16 %v214_v57, %v212_v56  ;;  %v216_v62 = vld [vmem:[#allocation8 + $0x100] sm:$0xff]  ;;  %v218_v63 = vld [vmem:[#allocation8 + $0x110] sm:$0xff] }
  0x46   :  { %464 = vmatprep.subr.bf16.mxu1 %v463_v31  ;;  %v483_v61 = vpack.c.bf16 %v219_v59, %v217_v58  ;;  %v221_v0 = vld [vmem:[#allocation8 + $0x128] sm:$0xff]  ;;  %v223_v1 = vld [vmem:[#allocation8 + $0x138] sm:$0xff]  ;;  %v485_v2 = vpack.c.bf16 %v218_v63, %v216_v62  ;;  %v220_v4 = vld [vmem:[#allocation8 + $0x120] sm:$0xff] }
  0x47   :  { %v487_v3 = vpack.c.bf16 %v223_v1, %v221_v0  ;;  %v222_v5 = vld [vmem:[#allocation8 + $0x130] sm:$0xff]  ;;  %v225_v6 = vld [vmem:[#allocation8 + $0x148] sm:$0xff]  ;;  %v227_v7 = vld [vmem:[#allocation8 + $0x158] sm:$0xff] }
  0x48   :  { %v489_v8 = vpack.c.bf16 %v222_v5, %v220_v4  ;;  %v491_v9 = vpack.c.bf16 %v227_v7, %v225_v6  ;;  %v224_v10 = vld [vmem:[#allocation8 + $0x140] sm:$0xff]  ;;  %v226_v11 = vld [vmem:[#allocation8 + $0x150] sm:$0xff]  ;;  %v229_v12 = vld [vmem:[#allocation8 + $0x168] sm:$0xff] }
  0x49   :  { %466 = vmatpush1.bf16.msra.mxu1 %v465_v36  ;;  %v231_v13 = vld [vmem:[#allocation8 + $0x178] sm:$0xff]  ;;  %v493_v14 = vpack.c.bf16 %v226_v11, %v224_v10  ;;  %v228_v16 = vld [vmem:[#allocation8 + $0x160] sm:$0xff]  ;;  %v230_v17 = vld [vmem:[#allocation8 + $0x170] sm:$0xff] }
  0x4a   :  { %468 = vmatprep.subr.bf16.mxu1 %v467_v37  ;;  %v495_v15 = vpack.c.bf16 %v231_v13, %v229_v12  ;;  %v233_v18 = vld [vmem:[#allocation8 + $0x188] sm:$0xff]  ;;  %v235_v19 = vld [vmem:[#allocation8 + $0x198] sm:$0xff]  ;;  %v497_v20 = vpack.c.bf16 %v230_v17, %v228_v16  ;;  %v232_v22 = vld [vmem:[#allocation8 + $0x180] sm:$0xff] }
  0x4b   :  { %v499_v21 = vpack.c.bf16 %v235_v19, %v233_v18  ;;  %v234_v23 = vld [vmem:[#allocation8 + $0x190] sm:$0xff]  ;;  %v237_v24 = vld [vmem:[#allocation8 + $0x1a8] sm:$0xff]  ;;  %v239_v25 = vld [vmem:[#allocation8 + $0x1b8] sm:$0xff]  ;;  %v343_v18 = vstv %s747_s6 }
  0x4c   :  { %v501_v26 = vpack.c.bf16 %v234_v23, %v232_v22  ;;  %v503_v27 = vpack.c.bf16 %v239_v25, %v237_v24  ;;  %v236_v28 = vld [vmem:[#allocation8 + $0x1a0] sm:$0xff]  ;;  %v238_v29 = vld [vmem:[#allocation8 + $0x1b0] sm:$0xff]  ;;  %v241_v30 = vld [vmem:[#allocation8 + $0x1c8] sm:$0xff] }
  0x4d   :  { %470 = vmatpush1.bf16.msra.mxu1 %v469_v42  ;;  %v243_v31 = vld [vmem:[#allocation8 + $0x1d8] sm:$0xff]  ;;  %v505_v32 = vpack.c.bf16 %v238_v29, %v236_v28  ;;  %v240_v34 = vld [vmem:[#allocation8 + $0x1c0] sm:$0xff]  ;;  %v242_v35 = vld [vmem:[#allocation8 + $0x1d0] sm:$0xff] }
  0x4e   :  { %472 = vmatprep.subr.bf16.mxu1 %v471_v43  ;;  %v507_v33 = vpack.c.bf16 %v243_v31, %v241_v30  ;;  %v509_v36 = vpack.c.bf16 %v242_v35, %v240_v34  ;;  %v245_v37 = vld [vmem:[#allocation8 + $0x1e8] sm:$0xff]  ;;  %v247_v38 = vld [vmem:[#allocation8 + $0x1f8] sm:$0xff]  ;;  %v244_v40 = vld [vmem:[#allocation8 + $0x1e0] sm:$0xff]  ;;  %v79_v43 = vlaneseq }
  0x4f   :  { %v511_v39 = vpack.c.bf16 %v247_v38, %v245_v37  ;;  %v246_v41 = vld [vmem:[#allocation8 + $0x1f0] sm:$0xff]  ;;  %v77_v46 = vld [vmem:[%s743_s2] sm:$0x3] }
  0x50   :  { %v513_v42 = vpack.c.bf16 %v246_v41, %v244_v40  ;;  %v80_v44 = vshrl.u32 %v79_v43, 7  ;;  %v341_v62 = vld [vmem:[%s746_s5] sm:$0x3] }
  0x51   :  { %474 = vmatpush1.bf16.msra.mxu1 %v473_v48  ;;  %v248_v0 = vld [vmem:[%s745_s4] sm:$0x3] }
  0x52   :  { %476 = vmatprep.subr.bf16.mxu1 %v475_v49  ;;  %v81_v45 = vsub.s32 0, %v80_v44  ;;  %v85_v47 = vsub.s32 1, %v80_v44 }
  0x54   :  { %v82_v48 = vrot.slane %v77_v46, %v81_v45  ;;  %v86_v49 = vrot.slane %v77_v46, %v85_v47  ;;  %v352_v63 = vrot.slane %v341_v62, %v85_v47  ;;  %v253_v1 = vrot.slane %v248_v0, %v81_v45 }
  0x55   :  { %478 = vmatpush1.bf16.msra.mxu1 %v477_v54  ;;  %v348_v17 = vrot.slane %v341_v62, %v81_v45 }
  0x56   :  { %480 = vmatprep.subr.bf16.mxu1 %v479_v55  ;;  %419 = vmatprep.mubr.f32.mxu0 %v352_v63 }
  0x59   :  { %482 = vmatpush1.bf16.msra.mxu1 %v481_v60 }
  0x5a   :  { %484 = vmatprep.subr.bf16.mxu1 %v483_v61 }
  0x5d   :  { %486 = vmatpush1.bf16.msra.mxu1 %v485_v2 }
  0x5e   :  { %488 = vmatprep.subr.bf16.mxu1 %v487_v3  ;;  %v257_v3 = vrot.slane %v248_v0, %v85_v47 }
  0x61   :  { %490 = vmatpush1.bf16.msra.mxu1 %v489_v8 }
  0x62   :  { %492 = vmatprep.subr.bf16.mxu1 %v491_v9 }
  0x65   :  { %494 = vmatpush1.bf16.msra.mxu1 %v493_v14 }
  0x66   :  { %496 = vmatprep.subr.bf16.mxu1 %v495_v15 }
  0x69   :  { %498 = vmatpush1.bf16.msra.mxu1 %v497_v20 }
  0x6a   :  { %500 = vmatprep.subr.bf16.mxu1 %v499_v21 }
  0x6d   :  { %502 = vmatpush1.bf16.msra.mxu1 %v501_v26 }
  0x6e   :  { %504 = vmatprep.subr.bf16.mxu1 %v503_v27 }
  0x71   :  { %506 = vmatpush1.bf16.msra.mxu1 %v505_v32 }
  0x72   :  { %508 = vmatprep.subr.bf16.mxu1 %v507_v33 }
  0x75   :  { %510 = vmatpush1.bf16.msra.mxu1 %v509_v36 }
  0x76   :  { %512 = vmatprep.subr.bf16.mxu1 %v511_v39 }
  0x79   :  { %514 = vmatpush1.bf16.msra.mxu1 %v513_v42 }
 0x113   :  { %v169_v50 = vpop.f32.mrb[0].mxu0 }
 0x114   :  { %v170_v51 = vadd.f32 %v169_v50, %v82_v48  ;;  %v171_v52 = vpop.f32.mrb[1].mxu0 }
 0x115   :  { %v172_v53 = vadd.f32 %v171_v52, %v86_v49 }
 0x116   :  { %v180_v56 = vmax.f32 %v170_v51, 0.0 }
 0x117   :  { %v175_v54 = vpop.f32.mrb[2].mxu0  ;;  %v181_v55 = vmax.f32 %v172_v53, 0.0 }
 0x118   :  { %v176_v57 = vadd.f32 %v175_v54, %v82_v48  ;;  %v177_v58 = vpop.f32.mrb[3].mxu0 }
 0x119   :  { %v178_v59 = vadd.f32 %v177_v58, %v86_v49  ;;  %324 = vmatprep.mubr.f32.mxu1 %v181_v55 }
 0x11a   :  { %325 = vmatmul.mubr.f32.vlgmr.msra.gmra.mrb[0].mxu1 %v180_v56  ;;  %v182_v61 = vmax.f32 %v176_v57, 0.0 }
 0x11b   :  { %v183_v60 = vmax.f32 %v178_v59, 0.0 }
 0x11d   :  { %330 = vmatprep.mubr.f32.mxu1 %v183_v60 }
 0x11e   :  { %331 = vmatmul.mubr.f32.gmra.mrb[2].mxu1 %v182_v61 }
 0x1ed   :  { %v326_v2 = vpop.f32.mrb[0].mxu1 }
 0x1ee   :  { %v328_v4 = vpop.f32.mrb[1].mxu1  ;;  %v327_v5 = vadd.f32 %v326_v2, %v253_v1 }
 0x1ef   :  { %v329_v6 = vadd.f32 %v328_v4, %v257_v3 }
 0x1f0   :  { %v337_v11 = vmax.f32 %v327_v5, 0.0 }
 0x1f1   :  { %v332_v7 = vpop.f32.mrb[2].mxu1  ;;  %v338_v13 = vmax.f32 %v329_v6, 0.0 }
 0x1f2   :  { %v333_v8 = vadd.f32 %v332_v7, %v253_v1  ;;  %v334_v9 = vpop.f32.mrb[3].mxu1 }
 0x1f3   :  { %v335_v10 = vadd.f32 %v334_v9, %v257_v3 }
 0x1f4   :  { %v339_v12 = vmax.f32 %v333_v8, 0.0 }
 0x1f5   :  { %v340_v14 = vmax.f32 %v335_v10, 0.0 }
 0x1f6   :  { %v517_v15 = vpack.c.bf16 %v339_v12, %v337_v11 }
 0x1f7   :  { %v515_v16 = vpack.c.bf16 %v340_v14, %v338_v13 }
 0x1f9   :  { %516 = vmatprep.subr.bf16.mxu0 %v515_v16 }
 0x1fa   :  { %518 = vmatpush1.bf16.xpose.msra.mxu0 %v517_v15 }
 0x201   :  { %420 = vmatmul.mubr.f32.vlgmr.msra.gmra.mrb[4].mxu0 %v348_v17 }
 0x2d4   :  { %v421_v19 = vpop.f32.mrb[4].mxu0 }
 0x2d5   :  { %v422_v20 = vadd.f32 %v421_v19, %v343_v18  ;;  %v423_v21 = vpop.f32.mrb[5].mxu0 }
 0x2d7   :  { %426 = vst.msk [vmem:[#allocation9] sm:$0x1] %vm425_vm2, %v422_v20 }
 0x2d8   :  { %605 = shalt.err (!%p602_p0)
}
 0x2d9   :  { %s606_s6 = scalar_lea.hbm %s748_s7, 16 }
 0x2da   :  { %p607_p1 = scmp.ne.s32.totalorder %s748_s7, %s606_s6  ;;  %p610_p2 = scmp.lt.u32.totalorder %s606_s6, %s748_s7 }
 0x2dc   :  { %p612_p3 = pnand %p610_p2, %p607_p1 }
 0x2de   :  { %615 = shalt.err (!%p612_p3)
}
 0x2df   :  { %436 = dma.vmem_to_hbm [thread:$0]  %s434_s21, 16, %s748_s7, [#allocation5]  }
 0x2e0   :  { %620 = dma.done.wait [#allocation5], 16  }
 0x2e1   :  { %621 = vsyncadd [#allocation5], 4294967280 }
 0x2e2   :  { %440 = vsyncpa [#allocation4], 1 }
 0x2e3   :  { %441 = vsyncpa [#allocation7], 1 }
 0x2e4   :  { %442 = vsyncpa [#allocation5], 1 }

</bundles_post_ra>
